<compile_context>
chip_gen: v7x
topology: tpu7x:2x2x1
jax: 0.10.0
libtpu: 0.0.40
codegen_flags: <defaults>
</compile_context>

<pallas_src>
import functools

import jax
import jax.numpy as jnp
from jax import lax
from jax.experimental import pallas as pl
from jax.experimental.pallas import tpu as pltpu


def _round_up(x, m):
    return (x + m - 1) // m * m


def _pick_tile(dim, candidates):
    for c in candidates:
        if dim % c == 0:
            return c
    return dim


# ----------------------------------------------------------------------------
# Pallas kernels
# ----------------------------------------------------------------------------
def _matmul_stats_kernel(a_ref, b_ref, o_ref, s_ref):
    # bf16 inputs, f32 accumulation on the MXU; full K per block (no reduction grid axis).
    y = jnp.dot(a_ref[...], b_ref[...], preferred_element_type=jnp.float32)
    o_ref[...] = y
    # Fused per-output-column sum / sum-of-squares for training-mode BatchNorm stats.
    ssum = jnp.sum(y, axis=0, keepdims=True)
    ssq = jnp.sum(y * y, axis=0, keepdims=True)
    s_ref[...] = jnp.concatenate([ssum, ssq], axis=0).reshape(1, 2, ssum.shape[-1])


def pallas_matmul_stats(a, b):
    """(M,K) @ (K,N) -> y_f32 (M,N), per-column sum (N,), per-column sumsq (N,).

    Operands are cast to bf16 (MXU native); no K/N padding; M padded to a multiple of 8
    only if needed (padded rows are zero so stats stay exact when divided by true M).
    """
    M, K = a.shape
    K2, Nc = b.shape
    assert K == K2
    a = a.astype(jnp.bfloat16)
    b = b.astype(jnp.bfloat16)
    Mp = _round_up(M, 8)
    if Mp != M:
        a = jnp.pad(a, ((0, Mp - M), (0, 0)))
    tm = Mp if Mp <= 256 else _pick_tile(Mp, (256, 128, 64, 32, 16, 8))
    tn = Nc if Nc <= 256 else _pick_tile(Nc, (256, 128))
    gm, gn = Mp // tm, Nc // tn

    y, stats = pl.pallas_call(
        _matmul_stats_kernel,
        out_shape=(jax.ShapeDtypeStruct((Mp, Nc), jnp.float32),
                   jax.ShapeDtypeStruct((gm, 2, Nc), jnp.float32)),
        grid_spec=pltpu.PrefetchScalarGridSpec(
            num_scalar_prefetch=0,
            grid=(gm, gn),
            in_specs=[pl.BlockSpec((tm, K), lambda i, j: (i, 0)),
                      pl.BlockSpec((K, tn), lambda i, j: (0, j))],
            out_specs=[pl.BlockSpec((tm, tn), lambda i, j: (i, j)),
                       pl.BlockSpec((1, 2, tn), lambda i, j: (i, 0, j))]),
        compiler_params=pltpu.CompilerParams(
            dimension_semantics=("parallel", "parallel"),
            vmem_limit_bytes=32 * 1024 * 1024),   # fits v5e/v6e/v7x scoped VMEM
    )(a, b)
    if Mp != M:
        y = y[:M]
    colsum = jnp.sum(stats[:, 0, :], axis=0)
    colsumsq = jnp.sum(stats[:, 1, :], axis=0)
    return y, colsum, colsumsq


def _activate(y, act):
    if act == "relu":
        return jnp.maximum(y, 0.0)
    if act == "sigmoid":
        # exact divide (keeps output strictly in [0, 1])
        return 1.0 / (1.0 + jnp.exp(-y))
    if act == "silu":
        # EUP approx reciprocal: divide is nearly free next to the exp
        return y * pl.reciprocal(1.0 + jnp.exp(-y), approx=True)
    return y


def _affine_act_kernel(x_ref, s_ref, b_ref, o_ref, *, act):
    o_ref[...] = _activate(x_ref[...] * s_ref[...] + b_ref[...], act)


def _affine_act_res_kernel(x_ref, s_ref, b_ref, r_ref, o_ref, *, act):
    o_ref[...] = _activate(x_ref[...] * s_ref[...] + b_ref[...] + r_ref[...], act)


def pallas_affine_act(x, scale, shift, act="none", residual=None):
    """y = act(x * scale + shift [+ residual]).

    x: (G, M, C) f32, scale/shift: (G, C) broadcast over rows, residual: (G, M, C) or None.
    The group axis G batches per-sample scale/shift (instance norm, attention) into one call.
    No channel padding (block last dim == full C); rows padded to a multiple of 8 only if
    needed; everything stays f32 on the VPU/EUP (bf16 only at the MXU boundary).
    """
    G, M, C = x.shape
    x = x.astype(jnp.float32)
    if residual is not None:
        residual = residual.astype(jnp.float32)
    Mp = _round_up(M, 8)
    if Mp != M:
        pad = ((0, 0), (0, Mp - M), (0, 0))
        x = jnp.pad(x, pad)
        if residual is not None:
            residual = jnp.pad(residual, pad)
    tm = Mp if Mp <= 1024 else _pick_tile(Mp, (1024, 512, 256, 128, 64, 32, 16, 8))

    s3 = scale.astype(jnp.float32).reshape(G, 1, C)
    b3 = shift.astype(jnp.float32).reshape(G, 1, C)
    x_spec = pl.BlockSpec((1, tm, C), lambda g, i: (g, i, 0))
    v_spec = pl.BlockSpec((1, 1, C), lambda g, i: (g, 0, 0))
    in_specs = [x_spec, v_spec, v_spec]
    args = [x, s3, b3]
    if residual is None:
        kern = functools.partial(_affine_act_kernel, act=act)
    else:
        kern = functools.partial(_affine_act_res_kernel, act=act)
        in_specs.append(x_spec)
        args.append(residual)

    out = pl.pallas_call(
        kern,
        out_shape=jax.ShapeDtypeStruct((G, Mp, C), jnp.float32),
        grid_spec=pltpu.PrefetchScalarGridSpec(
            num_scalar_prefetch=0,
            grid=(G, Mp // tm),
            in_specs=in_specs,
            out_specs=pl.BlockSpec((1, tm, C), lambda g, i: (g, i, 0))),
        compiler_params=pltpu.CompilerParams(
            dimension_semantics=("parallel", "parallel")),
    )(*args)
    if Mp != M:
        out = out[:, :M, :]
    return out


# ----------------------------------------------------------------------------
# Conv / norm / pooling / resize helpers (im2col + resize are plain-JAX glue)
# ----------------------------------------------------------------------------
def conv2d_matmul(x, w, stride=1, padding=0, dilation=1):
    """x: NHWC, w: torch OIHW. Returns (y (M,Cout) f32, colsum, colsumsq, (N,Ho,Wo))."""
    N, H, W, Cin = x.shape
    Cout, _, kh, kw = w.shape
    Ho = (H + 2 * padding - dilation * (kh - 1) - 1) // stride + 1
    Wo = (W + 2 * padding - dilation * (kw - 1) - 1) // stride + 1
    xb = x.astype(jnp.bfloat16)                      # bf16 patches: halves im2col HBM traffic
    if kh == 1 and kw == 1 and stride == 1 and padding == 0:
        patches = xb.reshape(N * Ho * Wo, Cin)       # 1x1 conv: no patch copy at all
    else:
        # TODO(synk): im2col still materializes a kh*kw-inflated patch blob in HBM; an
        #             implicit-GEMM conv with per-tap BlockSpec index maps would remove it.
        xp = jnp.pad(xb, ((0, 0), (padding, padding), (padding, padding), (0, 0))) \
            if padding > 0 else xb
        cols = []
        for i in range(kh):
            for j in range(kw):
                cols.append(xp[:,
                               i * dilation: i * dilation + stride * (Ho - 1) + 1: stride,
                               j * dilation: j * dilation + stride * (Wo - 1) + 1: stride,
                               :])
        patches = jnp.concatenate(cols, axis=-1).reshape(N * Ho * Wo, kh * kw * Cin)
    wm = jnp.transpose(w, (2, 3, 1, 0)).reshape(kh * kw * Cin, Cout).astype(jnp.bfloat16)
    y, colsum, colsumsq = pallas_matmul_stats(patches, wm)
    return y, colsum, colsumsq, (N, Ho, Wo)


def bn_scale_shift(colsum, colsumsq, count, gamma, beta, eps=1e-5):
    """BatchNorm2d training-mode (batch statistics, biased variance) from fused conv stats."""
    mean = colsum / count
    var = jnp.maximum(colsumsq / count - mean * mean, 0.0)
    scale = gamma * lax.rsqrt(var + eps)
    shift = beta - mean * scale
    return scale, shift


def conv_bn_act(x, w, gamma, beta, stride, padding, act="relu", dilation=1, residual=None):
    """conv -> BN(batch stats) -> [+residual] -> act, with stats fused into the matmul."""
    y2, cs, cq, (N, Ho, Wo) = conv2d_matmul(x, w, stride, padding, dilation)
    C = y2.shape[-1]
    M = N * Ho * Wo
    scale, shift = bn_scale_shift(cs, cq, float(M), gamma, beta)
    res = None if residual is None else residual.reshape(1, M, C)
    out = pallas_affine_act(y2.reshape(1, M, C), scale[None], shift[None],
                            act=act, residual=res)
    return out.reshape(N, Ho, Wo, C)


def apply_conv_bn_act(p, x, act="relu"):
    return conv_bn_act(x, p["w"], p["gamma"], p["beta"],
                       stride=p["stride"], padding=p["padding"],
                       act=act, dilation=p.get("dilation", 1))


def maxpool_3x3_s2_p1(x):
    return lax.reduce_window(x, -jnp.inf, lax.max,
                             (1, 3, 3, 1), (1, 2, 2, 1),
                             [(0, 0), (1, 1), (1, 1), (0, 0)])


def upsample_nearest(x, out_h, out_w):
    N, H, W, C = x.shape
    rows = jnp.clip(jnp.floor(jnp.arange(out_h, dtype=jnp.float32) * (H / out_h)).astype(jnp.int32), 0, H - 1)
    cols = jnp.clip(jnp.floor(jnp.arange(out_w, dtype=jnp.float32) * (W / out_w)).astype(jnp.int32), 0, W - 1)
    return x[:, rows][:, :, cols]


def upsample_bilinear_ac(x, out_h, out_w):
    """F.interpolate(..., mode='bilinear', align_corners=True)."""
    N, H, W, C = x.shape
    sy = (jnp.arange(out_h, dtype=jnp.float32) * ((H - 1) / (out_h - 1))
          if out_h > 1 else jnp.zeros((out_h,), jnp.float32))
    sx = (jnp.arange(out_w, dtype=jnp.float32) * ((W - 1) / (out_w - 1))
          if out_w > 1 else jnp.zeros((out_w,), jnp.float32))
    y0 = jnp.clip(jnp.floor(sy).astype(jnp.int32), 0, H - 1)
    y1 = jnp.clip(y0 + 1, 0, H - 1)
    wy = (sy - y0.astype(jnp.float32))[None, :, None, None]
    x0 = jnp.clip(jnp.floor(sx).astype(jnp.int32), 0, W - 1)
    x1 = jnp.clip(x0 + 1, 0, W - 1)
    wx = (sx - x0.astype(jnp.float32))[None, None, :, None]
    xy0 = x[:, y0]
    xy1 = x[:, y1]
    top = xy0[:, :, x0] * (1.0 - wx) + xy0[:, :, x1] * wx
    bot = xy1[:, :, x0] * (1.0 - wx) + xy1[:, :, x1] * wx
    return top * (1.0 - wy) + bot * wy


# ----------------------------------------------------------------------------
# Module forward functions (mirror the PyTorch modules)
# ----------------------------------------------------------------------------
def apply_basic_block(p, x):
    r = conv_bn_act(x, p["conv1_w"], p["bn1_gamma"], p["bn1_beta"],
                    stride=p["stride"], padding=1, act="relu")
    if "down_w" in p:
        sc = conv_bn_act(x, p["down_w"], p["down_gamma"], p["down_beta"],
                         stride=p["stride"], padding=0, act="none")
    else:
        sc = x
    # conv2 -> bn2, with (+shortcut) and ReLU fused into the affine epilogue
    return conv_bn_act(r, p["conv2_w"], p["bn2_gamma"], p["bn2_beta"],
                       stride=1, padding=1, act="relu", residual=sc)


def apply_resnet(p, x):
    y = conv_bn_act(x, p["conv1_w"], p["bn1_gamma"], p["bn1_beta"],
                    stride=2, padding=3, act="relu")
    y = maxpool_3x3_s2_p1(y)
    for blk in p["layer1"]:
        y = apply_basic_block(blk, y)
    for blk in p["layer2"]:
        y = apply_basic_block(blk, y)
    feat8 = y
    for blk in p["layer3"]:
        y = apply_basic_block(blk, y)
    feat16 = y
    for blk in p["layer4"]:
        y = apply_basic_block(blk, y)
    feat32 = y
    return feat8, feat16, feat32


def apply_arm(p, x):
    feat = apply_conv_bn_act(p["conv"], x, act="relu")
    N, H, W, C = feat.shape
    atten = jnp.mean(feat.reshape(N, H * W, C), axis=1)            # global avg pool (N, C)
    # Tiny (M = batch) matmuls: plain jnp.dot instead of a padded MXU tile.
    atten = jnp.dot(atten, p["atten_w"][:, :, 0, 0].T)             # 1x1 conv
    mean = jnp.mean(atten, axis=0)                                 # BN (training stats)
    var = jnp.maximum(jnp.mean(atten * atten, axis=0) - mean * mean, 0.0)
    scale = p["bn_gamma"] * lax.rsqrt(var + 1e-5)
    shift = p["bn_beta"] - mean * scale
    atten = jax.nn.sigmoid(atten * scale + shift)                  # (N, C)
    # feat * atten: per-sample scale batched over N in one Pallas call
    out = pallas_affine_act(feat.reshape(N, H * W, C), atten,
                            jnp.zeros_like(atten), act="none")
    return out.reshape(N, H, W, C)


def apply_context_path(p, x):
    feat8, feat16, feat32 = apply_resnet(p["resnet"], x)
    H8, W8 = feat8.shape[1:3]
    H16, W16 = feat16.shape[1:3]
    H32, W32 = feat32.shape[1:3]

    avg = jnp.mean(feat32, axis=(1, 2), keepdims=True)             # (N,1,1,512)
    avg = apply_conv_bn_act(p["conv_avg"], avg, act="relu")
    avg_up = upsample_nearest(avg, H32, W32)

    feat32_arm = apply_arm(p["arm32"], feat32)
    feat32_sum = feat32_arm + avg_up
    feat32_up = upsample_nearest(feat32_sum, H16, W16)
    feat32_up = apply_conv_bn_act(p["conv_head32"], feat32_up, act="relu")

    feat16_arm = apply_arm(p["arm16"], feat16)
    feat16_sum = feat16_arm + feat32_up
    feat16_up = upsample_nearest(feat16_sum, H8, W8)
    feat16_up = apply_conv_bn_act(p["conv_head16"], feat16_up, act="relu")

    return feat8, feat16_up, feat32_up


def apply_ffm(p, fsp, fcp):
    fcat = jnp.concatenate([fsp, fcp], axis=-1)
    feat = apply_conv_bn_act(p["convblk"], fcat, act="relu")
    N, H, W, C = feat.shape
    atten = jnp.mean(feat.reshape(N, H * W, C), axis=1)            # (N, C)
    atten = jnp.maximum(jnp.dot(atten, p["conv1_w"][:, :, 0, 0].T), 0.0)
    atten = jax.nn.sigmoid(jnp.dot(atten, p["conv2_w"][:, :, 0, 0].T))
    # feat*atten + feat == feat*(atten+1), batched per-sample scale in one Pallas call
    out = pallas_affine_act(feat.reshape(N, H * W, C), atten + 1.0,
                            jnp.zeros_like(atten), act="none")
    return out.reshape(N, H, W, C)


def apply_conv_in_silu(x, w):
    """ConvINSiLU: conv(dil=2,pad=2) -> InstanceNorm2d(affine=False) -> SiLU."""
    y2, _, _, (N, Ho, Wo) = conv2d_matmul(x, w, stride=1, padding=2, dilation=2)
    C = y2.shape[-1]
    y3 = y2.reshape(N, Ho * Wo, C)
    mean = jnp.mean(y3, axis=1)                                    # per-sample stats (N, C)
    var = jnp.maximum(jnp.mean(y3 * y3, axis=1) - mean * mean, 0.0)
    scale = lax.rsqrt(var + 1e-5)
    shift = -mean * scale
    out = pallas_affine_act(y3, scale, shift, act="silu")          # one call, grid over N
    return out.reshape(N, Ho, Wo, C)


def pallas_sigmoid(y):
    """Final sigmoid; folds the small channel dim into lanes when possible (lane-dense)."""
    shape = y.shape
    L = y.size
    if L % (8 * 128) == 0:
        flat = y.reshape(1, L // 128, 128)
        out = pallas_affine_act(flat, jnp.ones((1, 128), jnp.float32),
                                jnp.zeros((1, 128), jnp.float32), act="sigmoid")
        return out.reshape(shape)
    N, H, W, C = shape
    out = pallas_affine_act(y.reshape(1, N * H * W, C),
                            jnp.ones((1, C), jnp.float32),
                            jnp.zeros((1, C), jnp.float32), act="sigmoid")
    return out.reshape(shape)


def apply_bisenet(p, x_nchw):
    x = jnp.transpose(x_nchw, (0, 2, 3, 1)).astype(jnp.float32)    # NCHW -> NHWC
    N, H, W, _ = x.shape
    feat_res8, feat_cp8, feat_cp16 = apply_context_path(p["cp"], x)
    feat_fuse = apply_ffm(p["ffm"], feat_res8, feat_cp8)
    y = apply_conv_in_silu(feat_fuse, p["conv1_w"])
    y = upsample_bilinear_ac(y, H // 4, W // 4)
    y2, _, _, (_, Ho, Wo) = conv2d_matmul(y, p["conv3_w"], stride=1, padding=0, dilation=1)
    y = y2.reshape(N, Ho, Wo, y2.shape[-1])
    y = upsample_bilinear_ac(y, H, W)
    y = pallas_sigmoid(y)
    return jnp.transpose(y, (0, 3, 1, 2))                          # back to NCHW


# ----------------------------------------------------------------------------
# Deterministic parameter init (shapes match the PyTorch __init__s)
# TODO(synk): Resnet18.init_weight loads pretrained weights from model_zoo;
#             replaced here with deterministic random init (no checkpoint I/O).
# ----------------------------------------------------------------------------
class ParamGen:
    def __init__(self, key):
        self.key = key

    def conv(self, cout, cin, kh, kw):
        self.key, sub = jax.random.split(self.key)
        fan_in = cin * kh * kw
        return jax.random.normal(sub, (cout, cin, kh, kw), jnp.float32) / jnp.sqrt(float(fan_in))


def init_params(key, n_classes):
    pg = ParamGen(key)

    def cbr(cin, cout, ks, stride, padding, dilation=1):
        return {"w": pg.conv(cout, cin, ks, ks),
                "gamma": jnp.ones((cout,), jnp.float32),
                "beta": jnp.zeros((cout,), jnp.float32),
                "stride": stride, "padding": padding, "dilation": dilation}

    def block(cin, cout, stride):
        d = {"conv1_w": pg.conv(cout, cin, 3, 3),
             "bn1_gamma": jnp.ones((cout,), jnp.float32),
             "bn1_beta": jnp.zeros((cout,), jnp.float32),
             "conv2_w": pg.conv(cout, cout, 3, 3),
             "bn2_gamma": jnp.ones((cout,), jnp.float32),
             "bn2_beta": jnp.zeros((cout,), jnp.float32),
             "stride": stride}
        if cin != cout or stride != 1:
            d["down_w"] = pg.conv(cout, cin, 1, 1)
            d["down_gamma"] = jnp.ones((cout,), jnp.float32)
            d["down_beta"] = jnp.zeros((cout,), jnp.float32)
        return d

    resnet = {
        "conv1_w": pg.conv(64, 3, 7, 7),
        "bn1_gamma": jnp.ones((64,), jnp.float32),
        "bn1_beta": jnp.zeros((64,), jnp.float32),
        "layer1": [block(64, 64, 1), block(64, 64, 1)],
        "layer2": [block(64, 128, 2), block(128, 128, 1)],
        "layer3": [block(128, 256, 2), block(256, 256, 1)],
        "layer4": [block(256, 512, 2), block(512, 512, 1)],
    }

    def arm(cin, cout):
        return {"conv": cbr(cin, cout, 3, 1, 1),
                "atten_w": pg.conv(cout, cout, 1, 1),
                "bn_gamma": jnp.ones((cout,), jnp.float32),
                "bn_beta": jnp.zeros((cout,), jnp.float32)}

    cp = {"resnet": resnet,
          "arm16": arm(256, 128),
          "arm32": arm(512, 128),
          "conv_head32": cbr(128, 128, 3, 1, 1),
          "conv_head16": cbr(128, 128, 3, 1, 1),
          "conv_avg": cbr(512, 128, 1, 1, 0)}

    ffm = {"convblk": cbr(256, 256, 1, 1, 0),
           "conv1_w": pg.conv(64, 256, 1, 1),
           "conv2_w": pg.conv(256, 64, 1, 1)}

    return {"cp": cp, "ffm": ffm,
            "conv1_w": pg.conv(256, 256, 3, 3),   # ConvINSiLU (dilation=2, padding=2)
            "conv3_w": pg.conv(n_classes, 256, 1, 1)}


if __name__ == "__main__":
    key = jax.random.PRNGKey(0)
    pkey, xkey = jax.random.split(key)
    n_classes = 4
    params = init_params(pkey, n_classes)
    x = jax.random.normal(xkey, (2, 3, 64, 64), jnp.float32)

    out = apply_bisenet(params, x)
    out = jax.block_until_ready(out)

    assert out.shape == (2, n_classes, 64, 64), out.shape
    assert bool(jnp.all(jnp.isfinite(out)))
    assert bool(jnp.all((out >= 0.0) & (out <= 1.0)))   # final sigmoid
    print("KERNEL_OK")
</pallas_src>

<mosaic_0001>
module attributes {stable_mosaic.version = 11 : i64} {
  func.func @_matmul_stats_kernel(%arg0: i32, %arg1: i32, %arg2: memref<256x147xbf16, #tpu.memory_space<vmem>>, %arg3: memref<147x64xbf16, #tpu.memory_space<vmem>>, %arg4: memref<256x64xf32, #tpu.memory_space<vmem>>, %arg5: memref<1x2x64xf32, #tpu.memory_space<vmem>>) attributes {dimension_semantics = [#tpu.dimension_semantics<parallel>, #tpu.dimension_semantics<parallel>], iteration_bounds = array<i64: 8, 1>, scalar_prefetch = 0 : i64, scratch_operands = 0 : i64, tpu.core_type = #tpu.core_type<tc>, window_params = [{transform_indices = @transform_0, window_bounds = array<i64: 256, 147>}, {transform_indices = @transform_1, window_bounds = array<i64: 147, 64>}, {transform_indices = @transform_2, window_bounds = array<i64: 256, 64>}, {transform_indices = @transform_3, window_bounds = array<i64: 1, 2, 64>}]} {
    %c0 = arith.constant 0 : index
    %c0_0 = arith.constant 0 : index
    %0 = vector.load %arg2[%c0, %c0_0] : memref<256x147xbf16, #tpu.memory_space<vmem>>, vector<256x147xbf16>
    %c0_1 = arith.constant 0 : index
    %c0_2 = arith.constant 0 : index
    %1 = vector.load %arg3[%c0_1, %c0_2] : memref<147x64xbf16, #tpu.memory_space<vmem>>, vector<147x64xbf16>
    %cst = arith.constant dense<0.000000e+00> : vector<256x64xf32>
    %2 = tpu.matmul %0, %1, %cst {dimension_numbers = #tpu.dot_dimension_numbers<[1], [0], [0], [1], [0, 0, 1, 1], [], []>} : vector<256x147xbf16>, vector<147x64xbf16>, vector<256x64xf32> -> vector<256x64xf32>
    %c0_3 = arith.constant 0 : index
    %c0_4 = arith.constant 0 : index
    %3 = vector.load %arg4[%c0_3, %c0_4] : memref<256x64xf32, #tpu.memory_space<vmem>>, vector<256x64xf32>
    tpu.vector_store %arg4[%c0_3, %c0_4], %2 {strides = array<i32>} : memref<256x64xf32, #tpu.memory_space<vmem>>, vector<256x64xf32>,
    %cst_5 = arith.constant dense<0.000000e+00> : vector<64xf32>
    %4 = vector.multi_reduction <add>, %2, %cst_5 [0] : vector<256x64xf32> to vector<64xf32>
    %5 = vector.shape_cast %4 : vector<64xf32> to vector<1x64xf32>
    %6 = arith.mulf %2, %2 : vector<256x64xf32>
    %cst_6 = arith.constant dense<0.000000e+00> : vector<64xf32>
    %7 = vector.multi_reduction <add>, %6, %cst_6 [0] : vector<256x64xf32> to vector<64xf32>
    %8 = vector.shape_cast %7 : vector<64xf32> to vector<1x64xf32>
    %9 = tpu.concatenate %5, %8 in 0 : vector<1x64xf32>, vector<1x64xf32> -> vector<2x64xf32>
    %10 = vector.shape_cast %9 : vector<2x64xf32> to vector<1x2x64xf32>
    %c0_7 = arith.constant 0 : index
    %c0_8 = arith.constant 0 : index
    %c0_9 = arith.constant 0 : index
    %11 = vector.load %arg5[%c0_7, %c0_8, %c0_9] : memref<1x2x64xf32, #tpu.memory_space<vmem>>, vector<1x2x64xf32>
    tpu.vector_store %arg5[%c0_7, %c0_8, %c0_9], %10 {strides = array<i32>} : memref<1x2x64xf32, #tpu.memory_space<vmem>>, vector<1x2x64xf32>,
    return
  }
  func.func @transform_0(%arg0: i32, %arg1: i32) -> (i32, i32) {
    %c0_i32 = arith.constant 0 : i32
    %c0_i32_0 = arith.constant 0 : i32
    return %arg0, %c0_i32 : i32, i32
  }
  func.func @transform_1(%arg0: i32, %arg1: i32) -> (i32, i32) {
    %c0_i32 = arith.constant 0 : i32
    %c0_i32_0 = arith.constant 0 : i32
    return %c0_i32, %arg1 : i32, i32
  }
  func.func @transform_2(%arg0: i32, %arg1: i32) -> (i32, i32) {
    %c0_i32 = arith.constant 0 : i32
    return %arg0, %arg1 : i32, i32
  }
  func.func @transform_3(%arg0: i32, %arg1: i32) -> (i32, i32, i32) {
    %c0_i32 = arith.constant 0 : i32
    %c0_i32_0 = arith.constant 0 : i32
    return %arg0, %c0_i32, %arg1 : i32, i32, i32
  }
}

</mosaic_0001>

<bundles_post_ra>
// kernel: tpu_custom_call.1
= control target key start
LH: loop header
LB: loop body
LE: loop exit
PB: predicated region body
PF: predicated region fallthrough
CT: control target
= control target key end

     0   :  { %9 = vsyncpa [#allocation3], 0  ;;  %s1773_s0 = inlined_call_operand.vmem [shape: bf16[2048,147], index: 0, kind: input, shape index: {}]   ;;  %s1774_s1 = inlined_call_operand.vmem [shape: bf16[147,64], index: 1, kind: input, shape index: {}]   ;;  %s1775_s2 = inlined_call_operand.vmem [shape: f32[2048,64], index: 2, kind: output, shape index: {0}]   ;;  %s1776_s3 = inlined_call_operand.hbm [shape: f32[8,2,64], index: 3, kind: output, shape index: {1}]  }
   0x1   :  { %11 = vsyncpa [#allocation3 + $0x1], 0  ;;  %s1358_s12 = smov 0   ;;  %s1360_s13 = smov 0  }
   0x2   :  { %s1362_s14 = smov 0   ;;  %s1364_s15 = smov 0  }
   0x3   :  { %s1366_s16 = smov 0   ;;  %s1368_s17 = smov 0  }
   0x4 LB: > { %s1045_s18 = sadd.s32 4294967295, %s1333_s17   ;;  %s1046_s19 = sadd.s32 4294967294, %s1333_s17   ;;  %s1333_s17 = sphi %s1368_s17, %s17_s17   ;;  %s1329_s16 = sphi %s1366_s16, %s1783_s16   ;;  %s1325_s15 = sphi %s1364_s15, %s1782_s15   ;;  %s1321_s14 = sphi %s1362_s14, %s1781_s14   ;;  %s1317_s13 = sphi %s1360_s13, %s1780_s13   ;;  %s1313_s12 = sphi %s1358_s12, %s1779_s12  }
   0x5   : > { %s29_s20 = sadd.s32 1, %s1329_s16  ;;  %s118_s21 = sadd.s32 1, %s1321_s14 }
   0x6   : > { %p31_p0 = scmp.ge.s32.totalorder %s29_s20, 8  ;;  %p128_p1 = scmp.ne.s32.totalorder %s1321_s14, %s1317_s13 }
   0x7   : > { %p129_p2 = scmp.eq.s32.totalorder %s1045_s18, 7  ;;  %p134_p3 = scmp.ne.s32.totalorder %s1317_s13, %s1313_s12 }
   0x8   : > { %s1785_s20 = smov (%p31_p0, %s29_s20), 0  ;;  %p135_p5 = scmp.eq.s32.totalorder %s1046_s19, 7 }
   0x9   : > { %p1398_p4 = por %p129_p2, %p128_p1  ;;  %s113_s23 = ssub.s32 %s1329_s16, %s1785_s20 }
   0xa   : > { %p1050_p6 = scmp.ge.s32.totalorder %s1333_s17, 1  ;;  %p116_p7 = scmp.eq.s32.totalorder %s113_s23, 0 }
   0xb   : > { %p1405_p8 = por %p135_p5, %p134_p3  ;;  %p170_p9 = scmp.lt.s32.totalorder %s1333_s17, 9 }
   0xc   : > { %s1411_s25 = scalar_select %p116_p7, %s1321_s14, %s118_s21  }
   0xd   : > { %p171_p10 = pnand %p1050_p6, %p170_p9 }
   0xe   : > { %v1197_v0 = vld [vmem:[%s1774_s1] sm:$0xff] (!%p171_p10)   ;;  %v1335_v1 = vmov (!%p171_p10), 0   ;;  %v1198_v2 = vld [vmem:[%s1774_s1 + $0x8] sm:$0xff] (!%p171_p10)   ;;  %v1199_v3 = vld [vmem:[%s1774_s1 + $0x10] sm:$0xff] (!%p171_p10)   ;;  %s1423_s5 = sshll.u32 (!%p171_p10), %s1325_s15, 5  ;;  %vm480_vm0 = vcmask (!%p171_p10), 154624  }
   0xf   : > { %174 = sbr.rel (%p171_p10) target bundleno = 389 (0x185), region = 28  ;;  %536 = vmatprep.subr.bf16.mxu0 (!%p171_p10), %v1335_v1  ;;  %1120 = vmatprep.subr.bf16.mxu1 (!%p171_p10), %v1335_v1  ;;  %p208_p11 = scmp.lt.s32.totalorder (!%p171_p10), %s1423_s5, 255  ;;  %v1200_v4 = vld [vmem:[%s1774_s1 + $0x18] sm:$0xff] (!%p171_p10)   ;;  %v1201_v5 = vld [vmem:[%s1774_s1 + $0x20] sm:$0xff] (!%p171_p10)   ;;  %v1202_v7 = vld [vmem:[%s1774_s1 + $0x28] sm:$0xff] (!%p171_p10)   ;;  %vm529_vm1 = vcmask (!%p171_p10), 1040384  }
  0x10   : > { %537 = vmatpush1.bf16.msra.mxu0 (!%p171_p10), %v1197_v0  ;;  %1130 = vmatpush1.bf16.msra.mxu1 (!%p171_p10), %v1197_v0  ;;  %v1203_v9 = vld [vmem:[%s1774_s1 + $0x30] sm:$0xff] (!%p171_p10)   ;;  %v1204_v10 = vld [vmem:[%s1774_s1 + $0x38] sm:$0xff] (!%p171_p10)   ;;  %vm530_vm2 = vcmask (!%p171_p10), 1041408   ;;  %v1336_v11 = vmov (!%p171_p10), 65535   ;;  %v1205_v13 = vld [vmem:[%s1774_s1 + $0x40] sm:$0xff] (!%p171_p10)   ;;  %vm697_vm3 = vcmask (!%p171_p10), 523264   ;;  %s1725_s26 = scalar_lea.hbm (!%p171_p10), %s1776_s3, %s1423_s5 }
  0x11   : > { %538 = vmatprep.subr.bf16.mxu0 (!%p171_p10), %v1335_v1  ;;  %1121 = vmatprep.subr.bf16.mxu1 (!%p171_p10), %v1335_v1  ;;  %v531_v12 = vsel (!%p171_p10), %vm529_vm1, 4294967295, %v1336_v11  ;;  %v1206_v14 = vld [vmem:[%s1774_s1 + $0x48] ss:$0 sps:$4 sm:$0x33] (!%p171_p10)   ;;  %vm901_vm4 = vcmask (!%p171_p10), 517120   ;;  %s1337_s29 = smov (!%p171_p10), [#allocation2]  }
  0x12   : > { %v532_v15 = vsel (!%p171_p10), %vm530_vm2, %v531_v12, 0  ;;  %s1259_s30 = sshll.u32 (!%p171_p10), %s1337_s29, 4  ;;  %s1260_s30 = int_to_ptr.vmem [resolvable:$false] %s1259_s30 }
  0x13   : > { %v534_v16 = vand.u32 (!%p171_p10), %v1206_v14, %v532_v15  ;;  %s1261_s4 = scalar_lea.vmem (!%p171_p10), %s1260_s30, 64 }
  0x14   : > { %539 = vmatpush1.bf16.msra.mxu0 (!%p171_p10), %v1198_v2  ;;  %1131 = vmatpush1.bf16.msra.mxu1 (!%p171_p10), %v1198_v2 }
  0x15   : > { %540 = vmatprep.subr.bf16.mxu0 (!%p171_p10), %v1335_v1  ;;  %1122 = vmatprep.subr.bf16.mxu1 (!%p171_p10), %v1335_v1 }
  0x16   : > { %s1427_s6 = scalar_select %p208_p11, %s1423_s5, 255 }
  0x18   : > { %541 = vmatpush1.bf16.msra.mxu0 %v1199_v3  ;;  %1132 = vmatpush1.bf16.msra.mxu1 %v1199_v3  ;;  %s1119_s9 = sshll.u32 %s1427_s6, 3  ;;  %s204_s6 = sand.u32 1, %s1317_s13  }
  0x19   : > { %542 = vmatprep.subr.bf16.mxu0 %v1335_v1  ;;  %1123 = vmatprep.subr.bf16.mxu1 %v1335_v1  ;;  %s1438_s15 = scalar_lea.vmem %s1773_s0, %s1119_s9  ;;  %s1512_s18 = scalar_lea.vmem %s1775_s2, %s1119_s9 }
  0x1a   : > { %v1209_v6 = vld [vmem:[%s1438_s15 + $0x4] ss:$8 sps:$4 sm:$0xff]   ;;  %v1207_v17 = vld [vmem:[%s1438_s15] ss:$8 sps:$4 sm:$0xff]   ;;  %v1210_v19 = vld [vmem:[%s1438_s15 + $0x14] ss:$8 sps:$4 sm:$0xff]  }
  0x1b   : > { %1099 = vmatprep.mubr.msk.bf16.mxu0 %vm480_vm0, %v1209_v6  ;;  %v1221_v8 = vld [vmem:[%s1438_s15 + $0x84] ss:$8 sps:$4 sm:$0xff]   ;;  %v1219_v18 = vld [vmem:[%s1438_s15 + $0x80] ss:$8 sps:$4 sm:$0xff]   ;;  %v1225_v20 = vld [vmem:[%s1438_s15 + $0x94] ss:$8 sps:$4 sm:$0xff]  }
  0x1c   : > { %543 = vmatpush1.bf16.msra.mxu0 %v1200_v4  ;;  %1133 = vmatpush1.bf16.msra.mxu1 %v1200_v4  ;;  %v1212_v21 = vld [vmem:[%s1438_s15 + $0x10] ss:$8 sps:$4 sm:$0xff]   ;;  %v1213_v23 = vld [vmem:[%s1438_s15 + $0x24] ss:$8 sps:$4 sm:$0xff]   ;;  %v1215_v25 = vld [vmem:[%s1438_s15 + $0x20] ss:$8 sps:$4 sm:$0xff]  }
  0x1d   : > { %544 = vmatprep.subr.bf16.mxu0 %v1335_v1  ;;  %1124 = vmatprep.subr.bf16.mxu1 %v1335_v1  ;;  %v1227_v22 = vld [vmem:[%s1438_s15 + $0x90] ss:$8 sps:$4 sm:$0xff]   ;;  %v1231_v24 = vld [vmem:[%s1438_s15 + $0xa4] ss:$8 sps:$4 sm:$0xff]   ;;  %v1233_v26 = vld [vmem:[%s1438_s15 + $0xa0] ss:$8 sps:$4 sm:$0xff]  }
  0x1e   : > { %1107 = vmatprep.mubr.msk.bf16.mxu1 %vm480_vm0, %v1221_v8  ;;  %v1216_v27 = vld [vmem:[%s1438_s15 + $0x34] ss:$8 sps:$4 sm:$0xff]   ;;  %v1218_v29 = vld [vmem:[%s1438_s15 + $0x30] ss:$8 sps:$4 sm:$0xff]   ;;  %v1222_v31 = vld [vmem:[%s1438_s15 + $0x44] ss:$8 sps:$4 sm:$0xff]  }
  0x1f   : > { %v1237_v28 = vld [vmem:[%s1438_s15 + $0xb4] ss:$8 sps:$4 sm:$0xff]   ;;  %v1239_v30 = vld [vmem:[%s1438_s15 + $0xb0] ss:$8 sps:$4 sm:$0xff]   ;;  %v1243_v32 = vld [vmem:[%s1438_s15 + $0xc4] ss:$8 sps:$4 sm:$0xff]  }
  0x20   : > { %545 = vmatpush1.bf16.msra.mxu0 %v1201_v5  ;;  %1134 = vmatpush1.bf16.msra.mxu1 %v1201_v5  ;;  %v1224_v33 = vld [vmem:[%s1438_s15 + $0x40] ss:$8 sps:$4 sm:$0xff]   ;;  %v1228_v35 = vld [vmem:[%s1438_s15 + $0x54] ss:$8 sps:$4 sm:$0xff]   ;;  %v1230_v37 = vld [vmem:[%s1438_s15 + $0x50] ss:$8 sps:$4 sm:$0xff]  }
  0x21   : > { %546 = vmatprep.subr.bf16.mxu0 %v1335_v1  ;;  %1125 = vmatprep.subr.bf16.mxu1 %v1335_v1  ;;  %v1245_v34 = vld [vmem:[%s1438_s15 + $0xc0] ss:$8 sps:$4 sm:$0xff]   ;;  %v1246_v36 = vld [vmem:[%s1438_s15 + $0xd4] ss:$8 sps:$4 sm:$0xff]   ;;  %v1248_v38 = vld [vmem:[%s1438_s15 + $0xd0] ss:$8 sps:$4 sm:$0xff]  }
  0x22   : > { %v1234_v39 = vld [vmem:[%s1438_s15 + $0x64] ss:$8 sps:$4 sm:$0xff]   ;;  %v1236_v41 = vld [vmem:[%s1438_s15 + $0x60] ss:$8 sps:$4 sm:$0xff]   ;;  %v1240_v43 = vld [vmem:[%s1438_s15 + $0x74] ss:$8 sps:$4 sm:$0xff]  }
  0x23   : > { %v1249_v40 = vld [vmem:[%s1438_s15 + $0xe4] ss:$8 sps:$4 sm:$0xff]   ;;  %v1251_v42 = vld [vmem:[%s1438_s15 + $0xe0] ss:$8 sps:$4 sm:$0xff]   ;;  %v1252_v44 = vld [vmem:[%s1438_s15 + $0xf4] ss:$8 sps:$4 sm:$0xff]  }
  0x24   : > { %547 = vmatpush1.bf16.msra.mxu0 %v1202_v7  ;;  %1135 = vmatpush1.bf16.msra.mxu1 %v1202_v7  ;;  %v1242_v45 = vld [vmem:[%s1438_s15 + $0x70] ss:$8 sps:$4 sm:$0xff]   ;;  %s1051_s9 = sshll.u32 %s204_s6, 1  ;;  %s912_s27 = scalar_lea.sflag [#allocation3], %s204_s6 }
  0x25   : > { %548 = vmatprep.subr.bf16.mxu0 %v1335_v1  ;;  %1126 = vmatprep.subr.bf16.mxu1 %v1335_v1  ;;  %v1254_v46 = vld [vmem:[%s1438_s15 + $0xf0] ss:$8 sps:$4 sm:$0xff]   ;;  %s206_s15 = scalar_lea.vmem [#allocation2], %s1051_s9 }
  0x26   : > { %s930_s19 = sshll.u32 %s206_s15, 4  ;;  %s1727_s19 = int_to_ptr.vmem [resolvable:$true] %s930_s19 }
  0x27   : > { %s1255_s28 = scalar_lea.vmem %s1727_s19, 32  ;;  %p1262_p1 = scmp.lt.s32.totalorder %s1727_s19, %s1260_s30 }
  0x28   : > { %549 = vmatpush1.bf16.msra.mxu0 %v1203_v9  ;;  %1136 = vmatpush1.bf16.msra.mxu1 %v1203_v9  ;;  %p1256_p12 = scmp.ne.s32.totalorder %s1727_s19, %s1255_s28  ;;  %p1263_p2 = scmp.lt.s32.totalorder %s1261_s4, %s1255_s28 }
  0x29   : > { %550 = vmatprep.subr.bf16.mxu0 %v1335_v1  ;;  %1127 = vmatprep.subr.bf16.mxu1 %v1335_v1 }
  0x2a   : > { %p1257_p13 = pnand %p1256_p12, %p1398_p4  ;;  %p1264_p3 = por %p1263_p2, %p1262_p1 }
  0x2c   : > { %551 = vmatpush1.bf16.msra.mxu0 %v1204_v10  ;;  %1137 = vmatpush1.bf16.msra.mxu1 %v1204_v10  ;;  %p1258_p0 = pneg %p1257_p13 }
  0x2d   : > { %552 = vmatprep.subr.bf16.mxu0 %v1335_v1  ;;  %1128 = vmatprep.subr.bf16.mxu1 %v1335_v1 }
  0x2e   : > { %p1265_p5 = pnand %p1264_p3, %p1258_p0 }
  0x30   : > { %553 = vmatpush1.bf16.msra.mxu0 %v1205_v13  ;;  %1138 = vmatpush1.bf16.msra.mxu1 %v1205_v13 }
  0x31   : > { %554 = vmatprep.subr.bf16.mxu0 %v1335_v1  ;;  %1129 = vmatprep.subr.bf16.mxu1 %v1335_v1 }
  0x34   : > { %555 = vmatpush1.bf16.msra.mxu0 %v534_v16  ;;  %1139 = vmatpush1.bf16.msra.mxu1 %v534_v16 }
  0x37   : > { %569 = vmatmul.mubr.bf16.vlgmr.msra.gmra.mrb[0].mxu0 %v1207_v17  ;;  %633 = vmatmul.mubr.bf16.vlgmr.msra.gmra.mrb[0].mxu1 %v1219_v18 }
  0x38   : > { %1100 = vmatprep.mubr.msk.bf16.mxu0 %vm480_vm0, %v1210_v19  ;;  %1108 = vmatprep.mubr.msk.bf16.mxu1 %vm480_vm0, %v1225_v20 }
  0x3f   : > { %577 = vmatmul.mubr.bf16.gmra.mrb[4].mxu0 %v1212_v21  ;;  %641 = vmatmul.mubr.bf16.gmra.mrb[4].mxu1 %v1227_v22 }
  0x40   : > { %1101 = vmatprep.mubr.msk.bf16.mxu0 %vm480_vm0, %v1213_v23  ;;  %1109 = vmatprep.mubr.msk.bf16.mxu1 %vm480_vm0, %v1231_v24 }
  0x47   : > { %585 = vmatmul.mubr.bf16.gmra.mrb[8].mxu0 %v1215_v25  ;;  %649 = vmatmul.mubr.bf16.gmra.mrb[8].mxu1 %v1233_v26 }
  0x48   : > { %1102 = vmatprep.mubr.msk.bf16.mxu0 %vm480_vm0, %v1216_v27  ;;  %1110 = vmatprep.mubr.msk.bf16.mxu1 %vm480_vm0, %v1237_v28 }
  0x4f   : > { %593 = vmatmul.mubr.bf16.gmra.mrb[12].mxu0 %v1218_v29  ;;  %657 = vmatmul.mubr.bf16.gmra.mrb[12].mxu1 %v1239_v30 }
  0x50   : > { %1103 = vmatprep.mubr.msk.bf16.mxu0 %vm480_vm0, %v1222_v31  ;;  %1111 = vmatprep.mubr.msk.bf16.mxu1 %vm480_vm0, %v1243_v32 }
  0x57   : > { %601 = vmatmul.mubr.bf16.gmra.mrb[16].mxu0 %v1224_v33  ;;  %665 = vmatmul.mubr.bf16.gmra.mrb[16].mxu1 %v1245_v34 }
  0x58   : > { %1104 = vmatprep.mubr.msk.bf16.mxu0 %vm480_vm0, %v1228_v35  ;;  %1112 = vmatprep.mubr.msk.bf16.mxu1 %vm480_vm0, %v1246_v36 }
  0x5f   : > { %609 = vmatmul.mubr.bf16.gmra.mrb[20].mxu0 %v1230_v37  ;;  %673 = vmatmul.mubr.bf16.gmra.mrb[20].mxu1 %v1248_v38 }
  0x60   : > { %1105 = vmatprep.mubr.msk.bf16.mxu0 %vm480_vm0, %v1234_v39  ;;  %1113 = vmatprep.mubr.msk.bf16.mxu1 %vm480_vm0, %v1249_v40 }
  0x67   : > { %617 = vmatmul.mubr.bf16.gmra.mrb[24].mxu0 %v1236_v41  ;;  %681 = vmatmul.mubr.bf16.gmra.mrb[24].mxu1 %v1251_v42 }
  0x68   : > { %1106 = vmatprep.mubr.msk.bf16.mxu0 %vm480_vm0, %v1240_v43  ;;  %1114 = vmatprep.mubr.msk.bf16.mxu1 %vm480_vm0, %v1252_v44 }
  0x6f   : > { %625 = vmatmul.mubr.bf16.gmra.mrb[28].mxu0 %v1242_v45  ;;  %689 = vmatmul.mubr.bf16.gmra.mrb[28].mxu1 %v1254_v46 }
 0x10a   : > { %v570_v47 = vpop.f32.mrb[0].mxu0  ;;  %v1514_v48 = vpop.f32.mrb[0].mxu1 }
 0x10b   : > { %698 = vst.msk [vmem:[%s1512_s18] sm:$0xff] %vm697_vm3, %v570_v47  ;;  %v799_v49 = vmul.f32 %v570_v47, %v570_v47  ;;  %v572_v50 = vpop.f32.mrb[1].mxu0  ;;  %714 = vst.msk [vmem:[%s1512_s18 + $0x80] sm:$0xff] %vm697_vm3, %v1514_v48  ;;  %v636_v51 = vpop.f32.mrb[1].mxu1  ;;  %v730_v54 = vsel %vm697_vm3, %v570_v47, 0.0 }
 0x10c   : > { %v573_v52 = vpop.f32.mrb[2].mxu0  ;;  %v637_v53 = vpop.f32.mrb[2].mxu1 }
 0x10d   : > { %699 = vst.msk [vmem:[%s1512_s18 + $0x8] sm:$0xff] %vm697_vm3, %v573_v52  ;;  %v731_v55 = vsel %vm697_vm3, %v573_v52, 0.0  ;;  %v800_v56 = vmul.f32 %v573_v52, %v573_v52  ;;  %v575_v57 = vpop.f32.mrb[3].mxu0  ;;  %715 = vst.msk [vmem:[%s1512_s18 + $0x88] sm:$0xff] %vm697_vm3, %v637_v53  ;;  %v639_v58 = vpop.f32.mrb[3].mxu1  ;;  %v1528_v60 = vsel %vm697_vm3, %v637_v53, 0.0  ;;  %v816_v61 = vmul.f32 %v637_v53, %v637_v53 }
 0x10e   : > { %v732_v59 = vadd.f32 %v731_v55, %v730_v54  ;;  %v831_v62 = vsel %vm697_vm3, %v799_v49, 0.0 }
 0x10f   : > { %v832_v63 = vsel %vm697_vm3, %v800_v56, 0.0  ;;  %v1533_v1 = vsel %vm697_vm3, %v816_v61, 0.0 }
 0x110   : > { %v833_v0 = vadd.f32 %v832_v63, %v831_v62 }
 0x112   : > { %v578_v2 = vpop.f32.mrb[4].mxu0  ;;  %v642_v3 = vpop.f32.mrb[4].mxu1 }
 0x113   : > { %700 = vst.msk [vmem:[%s1512_s18 + $0x10] sm:$0xff] %vm697_vm3, %v578_v2  ;;  %v733_v4 = vsel %vm697_vm3, %v578_v2, 0.0  ;;  %v801_v5 = vmul.f32 %v578_v2, %v578_v2  ;;  %v580_v6 = vpop.f32.mrb[5].mxu0  ;;  %716 = vst.msk [vmem:[%s1512_s18 + $0x90] sm:$0xff] %vm697_vm3, %v642_v3  ;;  %v1541_v7 = vsel %vm697_vm3, %v642_v3, 0.0  ;;  %v817_v8 = vmul.f32 %v642_v3, %v642_v3  ;;  %v644_v9 = vpop.f32.mrb[5].mxu1 }
 0x114   : > { %v734_v10 = vadd.f32 %v733_v4, %v732_v59  ;;  %v581_v11 = vpop.f32.mrb[6].mxu0  ;;  %v645_v12 = vpop.f32.mrb[6].mxu1 }
 0x115   : > { %v834_v13 = vsel %vm697_vm3, %v801_v5, 0.0  ;;  %701 = vst.msk [vmem:[%s1512_s18 + $0x18] sm:$0xff] %vm697_vm3, %v581_v11  ;;  %v735_v14 = vsel %vm697_vm3, %v581_v11, 0.0  ;;  %v802_v15 = vmul.f32 %v581_v11, %v581_v11  ;;  %v583_v16 = vpop.f32.mrb[7].mxu0  ;;  %v1548_v17 = vsel %vm697_vm3, %v817_v8, 0.0  ;;  %717 = vst.msk [vmem:[%s1512_s18 + $0x98] sm:$0xff] %vm697_vm3, %v645_v12 }
 0x116   : > { %v647_v18 = vpop.f32.mrb[7].mxu1  ;;  %v835_v19 = vadd.f32 %v834_v13, %v833_v0  ;;  %v736_v20 = vadd.f32 %v735_v14, %v734_v10  ;;  %v1553_v21 = vsel %vm697_vm3, %v645_v12, 0.0  ;;  %v818_v22 = vmul.f32 %v645_v12, %v645_v12 }
 0x117   : > { %v836_v23 = vsel %vm697_vm3, %v802_v15, 0.0 }
 0x118   : > { %v837_v24 = vadd.f32 %v836_v23, %v835_v19  ;;  %v1557_v25 = vsel %vm697_vm3, %v818_v22, 0.0 }
 0x11a   : > { %v586_v26 = vpop.f32.mrb[8].mxu0  ;;  %v650_v27 = vpop.f32.mrb[8].mxu1 }
 0x11b   : > { %702 = vst.msk [vmem:[%s1512_s18 + $0x20] sm:$0xff] %vm697_vm3, %v586_v26  ;;  %v737_v28 = vsel %vm697_vm3, %v586_v26, 0.0  ;;  %v803_v29 = vmul.f32 %v586_v26, %v586_v26  ;;  %v588_v30 = vpop.f32.mrb[9].mxu0  ;;  %718 = vst.msk [vmem:[%s1512_s18 + $0xa0] sm:$0xff] %vm697_vm3, %v650_v27  ;;  %v1565_v31 = vsel %vm697_vm3, %v650_v27, 0.0  ;;  %v819_v32 = vmul.f32 %v650_v27, %v650_v27  ;;  %v652_v33 = vpop.f32.mrb[9].mxu1 }
 0x11c   : > { %v738_v34 = vadd.f32 %v737_v28, %v736_v20  ;;  %v589_v35 = vpop.f32.mrb[10].mxu0  ;;  %v653_v36 = vpop.f32.mrb[10].mxu1 }
 0x11d   : > { %v838_v37 = vsel %vm697_vm3, %v803_v29, 0.0  ;;  %703 = vst.msk [vmem:[%s1512_s18 + $0x28] sm:$0xff] %vm697_vm3, %v589_v35  ;;  %v739_v38 = vsel %vm697_vm3, %v589_v35, 0.0  ;;  %v804_v39 = vmul.f32 %v589_v35, %v589_v35  ;;  %v591_v40 = vpop.f32.mrb[11].mxu0  ;;  %v1572_v41 = vsel %vm697_vm3, %v819_v32, 0.0  ;;  %719 = vst.msk [vmem:[%s1512_s18 + $0xa8] sm:$0xff] %vm697_vm3, %v653_v36 }
 0x11e   : > { %v655_v42 = vpop.f32.mrb[11].mxu1  ;;  %v839_v43 = vadd.f32 %v838_v37, %v837_v24  ;;  %v740_v44 = vadd.f32 %v739_v38, %v738_v34  ;;  %v1577_v45 = vsel %vm697_vm3, %v653_v36, 0.0  ;;  %v820_v46 = vmul.f32 %v653_v36, %v653_v36 }
 0x11f   : > { %v840_v47 = vsel %vm697_vm3, %v804_v39, 0.0 }
 0x120   : > { %v841_v49 = vadd.f32 %v840_v47, %v839_v43  ;;  %v1581_v50 = vsel %vm697_vm3, %v820_v46, 0.0 }
 0x122   : > { %v594_v51 = vpop.f32.mrb[12].mxu0  ;;  %v658_v52 = vpop.f32.mrb[12].mxu1 }
 0x123   : > { %704 = vst.msk [vmem:[%s1512_s18 + $0x30] sm:$0xff] %vm697_vm3, %v594_v51  ;;  %v741_v53 = vsel %vm697_vm3, %v594_v51, 0.0  ;;  %v805_v54 = vmul.f32 %v594_v51, %v594_v51  ;;  %v596_v55 = vpop.f32.mrb[13].mxu0  ;;  %720 = vst.msk [vmem:[%s1512_s18 + $0xb0] sm:$0xff] %vm697_vm3, %v658_v52  ;;  %v1589_v56 = vsel %vm697_vm3, %v658_v52, 0.0  ;;  %v821_v57 = vmul.f32 %v658_v52, %v658_v52  ;;  %v660_v58 = vpop.f32.mrb[13].mxu1 }
 0x124   : > { %v742_v59 = vadd.f32 %v741_v53, %v740_v44  ;;  %v597_v61 = vpop.f32.mrb[14].mxu0  ;;  %v661_v62 = vpop.f32.mrb[14].mxu1 }
 0x125   : > { %v842_v63 = vsel %vm697_vm3, %v805_v54, 0.0  ;;  %705 = vst.msk [vmem:[%s1512_s18 + $0x38] sm:$0xff] %vm697_vm3, %v597_v61  ;;  %v743_v0 = vsel %vm697_vm3, %v597_v61, 0.0  ;;  %v806_v2 = vmul.f32 %v597_v61, %v597_v61  ;;  %v599_v3 = vpop.f32.mrb[15].mxu0  ;;  %v1596_v4 = vsel %vm697_vm3, %v821_v57, 0.0  ;;  %721 = vst.msk [vmem:[%s1512_s18 + $0xb8] sm:$0xff] %vm697_vm3, %v661_v62 }
 0x126   : > { %v663_v5 = vpop.f32.mrb[15].mxu1  ;;  %v843_v6 = vadd.f32 %v842_v63, %v841_v49  ;;  %v744_v8 = vadd.f32 %v743_v0, %v742_v59  ;;  %v1601_v9 = vsel %vm697_vm3, %v661_v62, 0.0  ;;  %v822_v10 = vmul.f32 %v661_v62, %v661_v62 }
 0x127   : > { %v844_v11 = vsel %vm697_vm3, %v806_v2, 0.0 }
 0x128   : > { %v845_v12 = vadd.f32 %v844_v11, %v843_v6  ;;  %v1605_v13 = vsel %vm697_vm3, %v822_v10, 0.0 }
 0x12a   : > { %v602_v14 = vpop.f32.mrb[16].mxu0  ;;  %v666_v15 = vpop.f32.mrb[16].mxu1 }
 0x12b   : > { %706 = vst.msk [vmem:[%s1512_s18 + $0x40] sm:$0xff] %vm697_vm3, %v602_v14  ;;  %v745_v16 = vsel %vm697_vm3, %v602_v14, 0.0  ;;  %v807_v18 = vmul.f32 %v602_v14, %v602_v14  ;;  %v604_v19 = vpop.f32.mrb[17].mxu0  ;;  %722 = vst.msk [vmem:[%s1512_s18 + $0xc0] sm:$0xff] %vm697_vm3, %v666_v15  ;;  %v1613_v20 = vsel %vm697_vm3, %v666_v15, 0.0  ;;  %v823_v22 = vmul.f32 %v666_v15, %v666_v15  ;;  %v668_v23 = vpop.f32.mrb[17].mxu1 }
 0x12c   : > { %v746_v24 = vadd.f32 %v745_v16, %v744_v8  ;;  %v605_v26 = vpop.f32.mrb[18].mxu0  ;;  %v669_v27 = vpop.f32.mrb[18].mxu1 }
 0x12d   : > { %v846_v28 = vsel %vm697_vm3, %v807_v18, 0.0  ;;  %707 = vst.msk [vmem:[%s1512_s18 + $0x48] sm:$0xff] %vm697_vm3, %v605_v26  ;;  %v747_v29 = vsel %vm697_vm3, %v605_v26, 0.0  ;;  %v808_v30 = vmul.f32 %v605_v26, %v605_v26  ;;  %v607_v32 = vpop.f32.mrb[19].mxu0  ;;  %v1620_v33 = vsel %vm697_vm3, %v823_v22, 0.0  ;;  %723 = vst.msk [vmem:[%s1512_s18 + $0xc8] sm:$0xff] %vm697_vm3, %v669_v27 }
 0x12e   : > { %v671_v34 = vpop.f32.mrb[19].mxu1  ;;  %v847_v35 = vadd.f32 %v846_v28, %v845_v12  ;;  %v748_v36 = vadd.f32 %v747_v29, %v746_v24  ;;  %v1625_v37 = vsel %vm697_vm3, %v669_v27, 0.0  ;;  %v824_v38 = vmul.f32 %v669_v27, %v669_v27 }
 0x12f   : > { %v848_v39 = vsel %vm697_vm3, %v808_v30, 0.0 }
 0x130   : > { %v849_v40 = vadd.f32 %v848_v39, %v847_v35  ;;  %v1629_v42 = vsel %vm697_vm3, %v824_v38, 0.0 }
 0x132   : > { %v610_v43 = vpop.f32.mrb[20].mxu0  ;;  %v674_v44 = vpop.f32.mrb[20].mxu1 }
 0x133   : > { %708 = vst.msk [vmem:[%s1512_s18 + $0x50] sm:$0xff] %vm697_vm3, %v610_v43  ;;  %v749_v46 = vsel %vm697_vm3, %v610_v43, 0.0  ;;  %v809_v47 = vmul.f32 %v610_v43, %v610_v43  ;;  %v612_v49 = vpop.f32.mrb[21].mxu0  ;;  %724 = vst.msk [vmem:[%s1512_s18 + $0xd0] sm:$0xff] %vm697_vm3, %v674_v44  ;;  %v1637_v51 = vsel %vm697_vm3, %v674_v44, 0.0  ;;  %v825_v52 = vmul.f32 %v674_v44, %v674_v44  ;;  %v676_v53 = vpop.f32.mrb[21].mxu1 }
 0x134   : > { %v750_v54 = vadd.f32 %v749_v46, %v748_v36  ;;  %v613_v55 = vpop.f32.mrb[22].mxu0  ;;  %v677_v57 = vpop.f32.mrb[22].mxu1 }
 0x135   : > { %v850_v58 = vsel %vm697_vm3, %v809_v47, 0.0  ;;  %709 = vst.msk [vmem:[%s1512_s18 + $0x58] sm:$0xff] %vm697_vm3, %v613_v55  ;;  %v751_v59 = vsel %vm697_vm3, %v613_v55, 0.0  ;;  %v810_v61 = vmul.f32 %v613_v55, %v613_v55  ;;  %v615_v62 = vpop.f32.mrb[23].mxu0  ;;  %v1644_v63 = vsel %vm697_vm3, %v825_v52, 0.0  ;;  %725 = vst.msk [vmem:[%s1512_s18 + $0xd8] sm:$0xff] %vm697_vm3, %v677_v57 }
 0x136   : > { %v679_v0 = vpop.f32.mrb[23].mxu1  ;;  %v851_v2 = vadd.f32 %v850_v58, %v849_v40  ;;  %v752_v3 = vadd.f32 %v751_v59, %v750_v54  ;;  %v1649_v5 = vsel %vm697_vm3, %v677_v57, 0.0  ;;  %v826_v6 = vmul.f32 %v677_v57, %v677_v57 }
 0x137   : > { %v852_v8 = vsel %vm697_vm3, %v810_v61, 0.0  ;;  %v815_v59 = vmul.f32 %v1514_v48, %v1514_v48 }
 0x138   : > { %v853_v10 = vadd.f32 %v852_v8, %v851_v2  ;;  %v1653_v11 = vsel %vm697_vm3, %v826_v6, 0.0 }
 0x13a   : > { %v618_v12 = vpop.f32.mrb[24].mxu0  ;;  %v682_v14 = vpop.f32.mrb[24].mxu1 }
 0x13b   : > { %710 = vst.msk [vmem:[%s1512_s18 + $0x60] sm:$0xff] %vm697_vm3, %v618_v12  ;;  %v753_v15 = vsel %vm697_vm3, %v618_v12, 0.0  ;;  %v811_v16 = vmul.f32 %v618_v12, %v618_v12  ;;  %v620_v18 = vpop.f32.mrb[25].mxu0  ;;  %726 = vst.msk [vmem:[%s1512_s18 + $0xe0] sm:$0xff] %vm697_vm3, %v682_v14  ;;  %v1661_v19 = vsel %vm697_vm3, %v682_v14, 0.0  ;;  %v827_v22 = vmul.f32 %v682_v14, %v682_v14  ;;  %v684_v23 = vpop.f32.mrb[25].mxu1 }
 0x13c   : > { %v754_v24 = vadd.f32 %v753_v15, %v752_v3  ;;  %v621_v26 = vpop.f32.mrb[26].mxu0  ;;  %v685_v27 = vpop.f32.mrb[26].mxu1 }
 0x13d   : > { %v854_v28 = vsel %vm697_vm3, %v811_v16, 0.0  ;;  %711 = vst.msk [vmem:[%s1512_s18 + $0x68] sm:$0xff] %vm697_vm3, %v621_v26  ;;  %v755_v29 = vsel %vm697_vm3, %v621_v26, 0.0  ;;  %v812_v30 = vmul.f32 %v621_v26, %v621_v26  ;;  %v623_v32 = vpop.f32.mrb[27].mxu0  ;;  %v1668_v34 = vsel %vm697_vm3, %v827_v22, 0.0  ;;  %727 = vst.msk [vmem:[%s1512_s18 + $0xe8] sm:$0xff] %vm697_vm3, %v685_v27 }
 0x13e   : > { %v687_v35 = vpop.f32.mrb[27].mxu1  ;;  %v855_v36 = vadd.f32 %v854_v28, %v853_v10  ;;  %v756_v38 = vadd.f32 %v755_v29, %v754_v24  ;;  %v787_v39 = vsel %vm697_vm3, %v685_v27, 0.0  ;;  %v828_v40 = vmul.f32 %v685_v27, %v685_v27 }
 0x13f   : > { %v856_v43 = vsel %vm697_vm3, %v812_v30, 0.0  ;;  %v761_v22 = vsel %vm697_vm3, %v1514_v48, 0.0  ;;  %v862_v28 = vsel %vm697_vm3, %v815_v59, 0.0 }
 0x140   : > { %v857_v44 = vadd.f32 %v856_v43, %v855_v36  ;;  %v888_v46 = vsel %vm697_vm3, %v828_v40, 0.0 }
 0x142   : > { %v626_v47 = vpop.f32.mrb[28].mxu0  ;;  %v690_v49 = vpop.f32.mrb[28].mxu1 }
 0x143   : > { %712 = vst.msk [vmem:[%s1512_s18 + $0x70] sm:$0xff] %vm697_vm3, %v626_v47  ;;  %v757_v52 = vsel %vm697_vm3, %v626_v47, 0.0  ;;  %v813_v53 = vmul.f32 %v626_v47, %v626_v47  ;;  %v628_v54 = vpop.f32.mrb[29].mxu0  ;;  %728 = vst.msk [vmem:[%s1512_s18 + $0xf0] sm:$0xff] %vm697_vm3, %v690_v49  ;;  %v789_v55 = vsel %vm697_vm3, %v690_v49, 0.0  ;;  %v829_v57 = vmul.f32 %v690_v49, %v690_v49  ;;  %v692_v58 = vpop.f32.mrb[29].mxu1 }
 0x144   : > { %v758_v61 = vadd.f32 %v757_v52, %v756_v38  ;;  %v629_v62 = vpop.f32.mrb[30].mxu0  ;;  %v693_v0 = vpop.f32.mrb[30].mxu1 }
 0x145   : > { %v858_v2 = vsel %vm697_vm3, %v813_v53, 0.0  ;;  %713 = vst.msk [vmem:[%s1512_s18 + $0x78] sm:$0xff] %vm697_vm3, %v629_v62  ;;  %v759_v3 = vsel %vm697_vm3, %v629_v62, 0.0  ;;  %v814_v6 = vmul.f32 %v629_v62, %v629_v62  ;;  %v631_v8 = vpop.f32.mrb[31].mxu0  ;;  %v890_v10 = vsel %vm697_vm3, %v829_v57, 0.0  ;;  %729 = vst.msk [vmem:[%s1512_s18 + $0xf8] sm:$0xff] %vm697_vm3, %v693_v0 }
 0x146   : > { %v695_v12 = vpop.f32.mrb[31].mxu1  ;;  %v859_v14 = vadd.f32 %v858_v2, %v857_v44  ;;  %v760_v15 = vadd.f32 %v759_v3, %v758_v61  ;;  %v791_v16 = vsel %vm697_vm3, %v693_v0, 0.0  ;;  %v830_v18 = vmul.f32 %v693_v0, %v693_v0 }
 0x147   : > { %v860_v23 = vsel %vm697_vm3, %v814_v6, 0.0 }
 0x148   : > { %v762_v24 = vadd.f32 %v761_v22, %v760_v15  ;;  %v861_v26 = vadd.f32 %v860_v23, %v859_v14  ;;  %v892_v27 = vsel %vm697_vm3, %v830_v18, 0.0 }
 0x14a   : > { %v764_v29 = vadd.f32 %v1528_v60, %v762_v24  ;;  %v863_v30 = vadd.f32 %v862_v28, %v861_v26 }
 0x14c   : > { %v766_v32 = vadd.f32 %v1541_v7, %v764_v29  ;;  %v865_v35 = vadd.f32 %v1533_v1, %v863_v30 }
 0x14e   : > { %v768_v36 = vadd.f32 %v1553_v21, %v766_v32  ;;  %v867_v38 = vadd.f32 %v1548_v17, %v865_v35 }
 0x150   : > { %v869_v48 = vadd.f32 %v1557_v25, %v867_v38  ;;  %v770_v40 = vadd.f32 %v1565_v31, %v768_v36 }
 0x152   : > { %v772_v43 = vadd.f32 %v1577_v45, %v770_v40  ;;  %v871_v44 = vadd.f32 %v1572_v41, %v869_v48 }
 0x154   : > { %v774_v47 = vadd.f32 %v1589_v56, %v772_v43  ;;  %v873_v60 = vadd.f32 %v1581_v50, %v871_v44 }
 0x156   : > { %v776_v7 = vadd.f32 %v1601_v9, %v774_v47  ;;  %v875_v1 = vadd.f32 %v1596_v4, %v873_v60 }
 0x158   : > { %v778_v21 = vadd.f32 %v1613_v20, %v776_v7  ;;  %v877_v17 = vadd.f32 %v1605_v13, %v875_v1 }
 0x15a   : > { %v879_v25 = vadd.f32 %v1620_v33, %v877_v17  ;;  %v780_v31 = vadd.f32 %v1625_v37, %v778_v21 }
 0x15c   : > { %v881_v45 = vadd.f32 %v1629_v42, %v879_v25  ;;  %v782_v41 = vadd.f32 %v1637_v51, %v780_v31 }
 0x15e   : > { %v883_v56 = vadd.f32 %v1644_v63, %v881_v45  ;;  %v784_v50 = vadd.f32 %v1649_v5, %v782_v41 }
 0x160   : > { %v885_v9 = vadd.f32 %v1653_v11, %v883_v56  ;;  %v786_v4 = vadd.f32 %v1661_v19, %v784_v50 }
 0x162   : > { %v887_v20 = vadd.f32 %v1668_v34, %v885_v9  ;;  %v788_v13 = vadd.f32 %v787_v39, %v786_v4 }
 0x164   : > { %v889_v49 = vadd.f32 %v888_v46, %v887_v20  ;;  %v790_v33 = vadd.f32 %v789_v55, %v788_v13 }
 0x166   : > { %v891_v52 = vadd.f32 %v890_v10, %v889_v49  ;;  %v792_v53 = vadd.f32 %v791_v16, %v790_v33 }
 0x168   : > { %v793_v37 = vrot.slane %v792_v53, 4  ;;  %v893_v54 = vadd.f32 %v892_v27, %v891_v52 }
 0x16a   : > { %v794_v42 = vadd.f32 %v793_v37, %v792_v53  ;;  %v894_v51 = vrot.slane %v893_v54, 4 }
 0x16c   : > { %v795_v63 = vrot.slane %v794_v42, 2  ;;  %v895_v57 = vadd.f32 %v894_v51, %v893_v54 }
 0x16e   : > { %v796_v5 = vadd.f32 %v795_v63, %v794_v42  ;;  %v896_v11 = vrot.slane %v895_v57, 2 }
 0x170   : > { %v797_v19 = vrot.slane %v796_v5, 1  ;;  %v897_v58 = vadd.f32 %v896_v11, %v895_v57 }
 0x172   : > { %v898_v34 = vrot.slane %v897_v58, 1  ;;  %v798_v39 = vadd.f32 %v797_v19, %v796_v5 }
 0x174   : > { %v899_v46 = vadd.f32 %v898_v34, %v897_v58 }
 0x176   : > { %v900_v55 = vsel %vm529_vm1, %v798_v39, %v899_v46 }
 0x177   : > { %902 = vst.msk [vmem:[%s206_s15] sm:$0x3] %vm901_vm4, %v900_v55 }
 0x178   : > { %1268 = shalt.err (!%p1265_p5)
}
 0x179   : > { %s1269_s5 = scalar_lea.hbm %s1725_s26, 32  ;;  %s1273_s10 = scalar_lea.hbm %s1776_s3, 256 }
 0x17a   : > { %p1270_p6 = scmp.ne.s32.totalorder %s1725_s26, %s1269_s5  ;;  %p1274_p10 = scmp.lt.u32.totalorder %s1725_s26, %s1776_s3 }
 0x17b   : > { %p1275_p11 = scmp.lt.u32.totalorder %s1273_s10, %s1269_s5  ;;  %p1277_p13 = scmp.lt.u32.totalorder %s1269_s5, %s1725_s26 }
 0x17c   : > { %p1271_p7 = pnand %p1270_p6, %p1398_p4 }
 0x17d   : > { %p1276_p12 = por %p1275_p11, %p1274_p10 }
 0x17e   : > { %p1272_p9 = pneg %p1271_p7 }
 0x17f   : > { %p1278_p0 = por %p1277_p13, %p1276_p12 }
 0x181   : > { %p1279_p1 = pnand %p1278_p0, %p1272_p9 }
 0x183   : > { %1282 = shalt.err (!%p1279_p1)
}
 0x184   : > { %1140 = dma.vmem_to_hbm [thread:$0]  (%p1398_p4), %s1727_s19, 32, %s1725_s26, %s912_s27  }
 0x185 PF: > { %p1146_p2 = scmp.ge.s32.totalorder %s1333_s17, 2  ;;  %s953_s6 = sand.u32 1, %s1313_s12  }
 0x186   : > { %s954_s9 = scalar_lea.sflag [#allocation3], %s953_s6 }
 0x187   : > { %p1143_p3 = pnand %p1146_p2, %p1405_p8 }
 0x189   : > { %1308 = dma.done.wait (!%p1143_p3), %s954_s9, 32  }
 0x18a   : > { %1310 = vsyncadd (!%p1143_p3), %s954_s9, 4294967264  ;;  %s17_s17 = sadd.s32 1, %s1333_s17   ;;  %s1779_s12 = smov %s1317_s13 }
 0x18b   : > { %p14_p5 = scmp.ge.s32.totalorder %s17_s17, 10   ;;  %s1780_s13 = smov %s1321_s14 }
 0x18c   : > { %s1781_s14 = smov %s1411_s25  ;;  %s1782_s15 = smov %s1329_s16 }
 0x18d   : > { %s1783_s16 = smov %s1785_s20  ;;  %16 = sbr.rel (!%p14_p5) target bundleno = 4 (0x4), region = 78 }
 0x194   :  { %959 = vsyncpa [#allocation3], 1 }
 0x195   :  { %961 = vsyncpa [#allocation3 + $0x1], 1 }

</bundles_post_ra>
